<compile_context>
chip_gen: v6e
topology: v6e:2x2x1
jax: 0.10.0
libtpu: 0.0.40
codegen_flags: <defaults>
</compile_context>

<pallas_src>
import jax
import jax.numpy as jnp
from jax.experimental import pallas as pl
from jax.experimental.pallas import tpu as pltpu


def _round_up(n, m):
    return ((n + m - 1) // m) * m


def mlp_kernel(x_ref, w1t_ref, b1c_ref, w2r_ref, b2_ref, o_ref):
    # Layer 1 on the MXU, emitted transposed: contract the feature axis of both
    # operands ("NT" matmul) -> h^T of shape (HID, TB), batch lane-dense.
    ht = jax.lax.dot_general(
        w1t_ref[...], x_ref[...],
        dimension_numbers=(((1,), (1,)), ((), ())),
        preferred_element_type=jnp.float32)                 # (HID, TB) f32
    ht = jnp.maximum(ht + b1c_ref[...], 0.0)                # lane-dense bias + ReLU
    # Layer 2: tiny (1, HID) @ (HID, TB) MXU matmul -> (1, TB), still lane-dense.
    y = jnp.dot(w2r_ref[...], ht, preferred_element_type=jnp.float32)
    # Scalar bias from SMEM + sigmoid; one unmasked lane-dense row store.
    o_ref[0] = jax.nn.sigmoid(y + b2_ref[0, 0]).astype(o_ref.dtype)


def simple_model_forward(x, w1, b1, w2, b2, *, tile_b=16384,
                         vmem_limit_bytes=48 * 1024 * 1024):
    """x: (B, 10).  w1: (10, 5), b1: (1, 5), w2: (5, 1), b2: (1, 1)."""
    B, IN = x.shape
    HID = w1.shape[1]

    # Batch tile: multiple of 128 lanes, capped so (a) it never exceeds half the batch
    # (>= 2 grid steps for v7x's 2 TensorCores when B allows), (b) the double-buffered
    # lane-padded x tile stays inside the per-generation VMEM budget.
    half = _round_up(pl.cdiv(max(B, 1), 2), 128)
    tb = min(_round_up(int(tile_b), 128), half)
    num_tiles = pl.cdiv(B, tb)          # ragged final block: Pallas masks the DMA

    cdt = x.dtype                        # keep caller dtype (bf16 upstream => 2x less HBM)
    w1t = jnp.transpose(jnp.reshape(w1, (IN, HID))).astype(cdt)     # (HID, IN)
    b1c = jnp.reshape(b1, (HID, 1)).astype(jnp.float32)             # column, lane-bcast
    w2r = jnp.reshape(w2, (1, HID)).astype(jnp.float32)             # row for (1,H)@(H,TB)
    b2s = jnp.reshape(b2, (1, 1)).astype(jnp.float32)               # scalar -> SMEM

    out3d = pl.pallas_call(
        mlp_kernel,
        out_shape=jax.ShapeDtypeStruct((num_tiles, 1, tb), jnp.float32),
        grid_spec=pltpu.PrefetchScalarGridSpec(
            num_scalar_prefetch=0,
            grid=(num_tiles,),
            in_specs=[
                pl.BlockSpec((tb, IN), lambda i: (i, 0)),    # streamed batch tiles
                pl.BlockSpec((HID, IN), lambda i: (0, 0)),   # resident W1^T
                pl.BlockSpec((HID, 1), lambda i: (0, 0)),    # resident b1 (column)
                pl.BlockSpec((1, HID), lambda i: (0, 0)),    # resident w2 (row)
                pl.BlockSpec(memory_space=pltpu.MemorySpace.SMEM),   # b2 scalar
            ],
            out_specs=pl.BlockSpec((1, 1, tb), lambda i: (i, 0, 0)),  # lane-dense rows
        ),
        compiler_params=pltpu.CompilerParams(
            dimension_semantics=("parallel",),       # 2-TC sharding on v7x
            vmem_limit_bytes=int(vmem_limit_bytes),  # 48 MiB: safe on v7x's 64 MiB
        ),
    )(x, w1t, b1c, w2r, b2s)

    # Lane-dense (num_tiles, 1, tb) -> (B, 1); tail of the last tile is sliced off.
    return out3d.reshape(num_tiles * tb)[:B].reshape(B, 1)


def reference_forward(x, w1, b1, w2, b2):
    h = jnp.maximum(x @ w1 + b1, 0.0)
    return jax.nn.sigmoid(h @ w2 + b2)


if __name__ == "__main__":
    key = jax.random.PRNGKey(0)
    kx, kw1, kb1, kw2, kb2 = jax.random.split(key, 5)

    IN, HID, OUT = 10, 5, 1

    # Deterministic parameter init (synthetic weights, PyTorch-like uniform scale).
    w1 = jax.random.uniform(kw1, (IN, HID), jnp.float32, -0.3, 0.3)
    b1 = jax.random.uniform(kb1, (1, HID), jnp.float32, -0.3, 0.3)
    w2 = jax.random.uniform(kw2, (HID, OUT), jnp.float32, -0.4, 0.4)
    b2 = jax.random.uniform(kb2, (1, OUT), jnp.float32, -0.4, 0.4)

    # Batches exercising: tiny batch (single ragged tile), non-multiple-of-128 batch,
    # exact 2-tile split, and a multi-row case with a ragged final block (no jnp.pad).
    for B in (8, 200, 512, 5000):
        x = jax.random.normal(jax.random.fold_in(kx, B), (B, IN), dtype=jnp.float32)
        out = jax.block_until_ready(simple_model_forward(x, w1, b1, w2, b2))
        ref = reference_forward(x, w1, b1, w2, b2)
        assert out.shape == (B, OUT), out.shape
        assert jnp.allclose(out, ref, atol=1e-5, rtol=1e-5), f"mismatch vs reference (B={B})"

    print("KERNEL_OK")
</pallas_src>

<mosaic_0001>
module attributes {stable_mosaic.version = 11 : i64} {
  func.func @mlp_kernel(%arg0: i32, %arg1: memref<128x10xf32, #tpu.memory_space<vmem>>, %arg2: memref<5x10xf32, #tpu.memory_space<vmem>>, %arg3: memref<5x1xf32, #tpu.memory_space<vmem>>, %arg4: memref<1x5xf32, #tpu.memory_space<vmem>>, %arg5: memref<1x1xf32, #tpu.memory_space<smem>>, %arg6: memref<1x1x128xf32, #tpu.memory_space<vmem>>) attributes {dimension_semantics = [#tpu.dimension_semantics<parallel>], iteration_bounds = array<i64: 1>, scalar_prefetch = 0 : i64, scratch_operands = 0 : i64, tpu.core_type = #tpu.core_type<tc>, window_params = [{transform_indices = @transform_0, window_bounds = array<i64: 128, 10>}, {pipeline_mode = #tpu.pipeline_mode<synchronous>, transform_indices = @transform_1, window_bounds = array<i64: 5, 10>}, {pipeline_mode = #tpu.pipeline_mode<synchronous>, transform_indices = @transform_2, window_bounds = array<i64: 5, 1>}, {pipeline_mode = #tpu.pipeline_mode<synchronous>, transform_indices = @transform_3, window_bounds = array<i64: 1, 5>}, {transform_indices = @transform_4, window_bounds = array<i64: 1, 1>}, {transform_indices = @transform_5, window_bounds = array<i64: 1, 1, 128>}]} {
    %c0 = arith.constant 0 : index
    %c0_0 = arith.constant 0 : index
    %0 = vector.load %arg2[%c0, %c0_0] : memref<5x10xf32, #tpu.memory_space<vmem>>, vector<5x10xf32>
    %c0_1 = arith.constant 0 : index
    %c0_2 = arith.constant 0 : index
    %1 = vector.load %arg1[%c0_1, %c0_2] : memref<128x10xf32, #tpu.memory_space<vmem>>, vector<128x10xf32>
    %cst = arith.constant dense<0.000000e+00> : vector<5x128xf32>
    %2 = tpu.matmul %0, %1, %cst {dimension_numbers = #tpu.dot_dimension_numbers<[1], [1], [0], [0], [0, 0, 1, 0], [], []>} : vector<5x10xf32>, vector<128x10xf32>, vector<5x128xf32> -> vector<5x128xf32>
    %c0_3 = arith.constant 0 : index
    %c0_4 = arith.constant 0 : index
    %3 = vector.load %arg3[%c0_3, %c0_4] : memref<5x1xf32, #tpu.memory_space<vmem>>, vector<5x1xf32>
    %4 = vector.broadcast %3 : vector<5x1xf32> to vector<5x128xf32>
    %5 = arith.addf %2, %4 : vector<5x128xf32>
    %cst_5 = arith.constant 0.000000e+00 : f32
    %6 = vector.broadcast %cst_5 : f32 to vector<5x128xf32>
    %7 = arith.maximumf %5, %6 : vector<5x128xf32>
    %c0_6 = arith.constant 0 : index
    %c0_7 = arith.constant 0 : index
    %8 = vector.load %arg4[%c0_6, %c0_7] : memref<1x5xf32, #tpu.memory_space<vmem>>, vector<1x5xf32>
    %cst_8 = arith.constant dense<0.000000e+00> : vector<1x128xf32>
    %9 = tpu.matmul %8, %7, %cst_8 {dimension_numbers = #tpu.dot_dimension_numbers<[1], [0], [0], [1], [0, 0, 1, 1], [], []>} : vector<1x5xf32>, vector<5x128xf32>, vector<1x128xf32> -> vector<1x128xf32>
    %c0_9 = arith.constant 0 : index
    %c0_10 = arith.constant 0 : index
    %10 = memref.load %arg5[%c0_9, %c0_10] : memref<1x1xf32, #tpu.memory_space<smem>>
    %11 = vector.broadcast %10 : f32 to vector<1x128xf32>
    %12 = arith.addf %9, %11 : vector<1x128xf32>
    %13 = arith.negf %12 : vector<1x128xf32>
    %14 = math.exp %13 : vector<1x128xf32>
    %cst_11 = arith.constant 1.000000e+00 : f32
    %15 = vector.broadcast %cst_11 : f32 to vector<1x128xf32>
    %16 = arith.addf %15, %14 : vector<1x128xf32>
    %17 = arith.divf %15, %16 : vector<1x128xf32>
    %c0_12 = arith.constant 0 : index
    %c0_13 = arith.constant 0 : index
    %c0_14 = arith.constant 0 : index
    %18 = vector.load %arg6[%c0_12, %c0_13, %c0_14] : memref<1x1x128xf32, #tpu.memory_space<vmem>>, vector<1x1x128xf32>
    %19 = vector.shape_cast %18 : vector<1x1x128xf32> to vector<1x128xf32>
    %20 = vector.shape_cast %17 : vector<1x128xf32> to vector<1x1x128xf32>
    tpu.vector_store %arg6[%c0_12, %c0_13, %c0_14], %20 {strides = array<i32>} : memref<1x1x128xf32, #tpu.memory_space<vmem>>, vector<1x1x128xf32>,
    return
  }
  func.func @transform_0(%arg0: i32) -> (i32, i32) {
    %c0_i32 = arith.constant 0 : i32
    %c0_i32_0 = arith.constant 0 : i32
    return %arg0, %c0_i32 : i32, i32
  }
  func.func @transform_1(%arg0: i32) -> (i32, i32) {
    %c0_i32 = arith.constant 0 : i32
    %c0_i32_0 = arith.constant 0 : i32
    %c0_i32_1 = arith.constant 0 : i32
    return %c0_i32, %c0_i32_0 : i32, i32
  }
  func.func @transform_2(%arg0: i32) -> (i32, i32) {
    %c0_i32 = arith.constant 0 : i32
    %c0_i32_0 = arith.constant 0 : i32
    %c0_i32_1 = arith.constant 0 : i32
    return %c0_i32, %c0_i32_0 : i32, i32
  }
  func.func @transform_3(%arg0: i32) -> (i32, i32) {
    %c0_i32 = arith.constant 0 : i32
    %c0_i32_0 = arith.constant 0 : i32
    %c0_i32_1 = arith.constant 0 : i32
    return %c0_i32, %c0_i32_0 : i32, i32
  }
  func.func @transform_4(%arg0: i32) -> (i32, i32) {
    %c0_i32 = arith.constant 0 : i32
    %c0_i32_0 = arith.constant 0 : i32
    %c0_i32_1 = arith.constant 0 : i32
    return %c0_i32, %c0_i32_0 : i32, i32
  }
  func.func @transform_5(%arg0: i32) -> (i32, i32, i32) {
    %c0_i32 = arith.constant 0 : i32
    %c0_i32_0 = arith.constant 0 : i32
    %c0_i32_1 = arith.constant 0 : i32
    return %arg0, %c0_i32, %c0_i32_0 : i32, i32, i32
  }
}

</mosaic_0001>

<bundles_post_ra>
// kernel: tpu_custom_call.1
= control target key start
LH: loop header
LB: loop body
LE: loop exit
PB: predicated region body
PF: predicated region fallthrough
CT: control target
= control target key end

     0   :  { %11 = vsyncpa [#allocation4], 0  ;;  %s531_s0 = inlined_call_operand.vmem [shape: f32[8,10], index: 0, kind: input, shape index: {}]   ;;  %s532_s1 = inlined_call_operand.hbm [shape: f32[5,10], index: 1, kind: input, shape index: {}]   ;;  %s533_s2 = inlined_call_operand.vmem [shape: f32[5,1], index: 2, kind: input, shape index: {}]   ;;  %s534_s3 = inlined_call_operand.vmem [shape: f32[1,5], index: 3, kind: input, shape index: {}]   ;;  %s535_s4 = inlined_call_operand.<no memory space> [shape: f32[1,1], index: 4, kind: input, shape index: {}]   ;;  %s536_s5 = inlined_call_operand.hbm [shape: f32[1,1,128], index: 5, kind: output, shape index: {}]  }
   0x1   :  { %12 = vsyncpa [#allocation5], 0  ;;  %s416_s18 = smov [#allocation3]  }
   0x2   :  { %s21_s19 = sshll.u32 %s416_s18, 4  ;;  %s22_s19 = int_to_ptr.vmem [resolvable:$true] %s21_s19 }
   0x3   :  { %s380_s20 = scalar_lea.vmem %s22_s19, 128  ;;  %p385_p1 = scmp.lt.s32.totalorder %s22_s19, %s22_s19 }
   0x4   :  { %p381_p0 = scmp.ne.s32.totalorder %s22_s19, %s380_s20  ;;  %p386_p2 = scmp.lt.s32.totalorder %s380_s20, %s380_s20 }
   0x6   :  { %p387_p3 = por %p386_p2, %p385_p1 }
   0x8   :  { %p388_p4 = pnand %p387_p3, %p381_p0 }
   0xa   :  { %391 = shalt.err (!%p388_p4)
}
   0xb   :  { %24 = dma.hbm_to_vmem [thread:$0]  %s532_s1, 128, %s22_s19, [#allocation4]  }
   0xc   :  { %412 = dma.done.wait [#allocation4], 128  }
   0xd   :  { %413 = vsyncadd [#allocation4], 4294967168  ;;  %v417_v0 = vmov 0.0   ;;  %vm418_vm0 = vmmov 0   ;;  %v419_v1 = vmov 0   ;;  %vm57_vm1 = vcmask 80896  }
   0xe   :  { %322 = vmatprep.subr.mxu0 %v417_v0  ;;  %354 = vmatprep.mubr.msk.f32.mxu0 %vm418_vm0, %v417_v0  ;;  %v50_v2 = vld [vmem:[%s531_s0 + $0x78] sm:$0xff]  ;;  %v49_v3 = vld [vmem:[%s531_s0 + $0x70] sm:$0xff]  ;;  %v51_v4 = vld [vmem:[%s533_s2] sm:$0x1f]  ;;  %vm187_vm2 = vcmask 1044480   ;;  %vm183_vm3 = vcmask 39936   ;;  %v182_v26 = vstv %s535_s4 }
   0xf   :  { %367 = vset.pattern.permute.xlu0 %v419_v1  ;;  %357 = vmatprep.subr.mxu1 %v417_v0  ;;  %v48_v5 = vld [vmem:[%s531_s0 + $0x68] sm:$0xff]  ;;  %v47_v6 = vld [vmem:[%s531_s0 + $0x60] sm:$0xff]  ;;  %v46_v7 = vld [vmem:[%s531_s0 + $0x58] sm:$0xff]  ;;  %s420_s7 = smov [#allocation6]  }
  0x10   :  { %359 = vmatprep.mubr.msk.f32.mxu1 %vm418_vm0, %v417_v0  ;;  %323 = vmatpush3.xpose.msk.msra.mxu0 %vm57_vm1, %v50_v2  ;;  %v45_v8 = vld [vmem:[%s531_s0 + $0x50] sm:$0xff]  ;;  %v44_v9 = vld [vmem:[%s531_s0 + $0x48] sm:$0xff]  ;;  %v43_v10 = vld [vmem:[%s531_s0 + $0x40] sm:$0xff]  ;;  %s274_s8 = sshll.u32 %s420_s7, 4  ;;  %s275_s8 = int_to_ptr.vmem [resolvable:$true] %s274_s8 }
  0x11   :  { %324 = vmatprep.subr.mxu0 %v417_v0  ;;  %54 = vperm.xlu0 %367, %v51_v4   ;;  %v42_v11 = vld [vmem:[%s531_s0 + $0x38] sm:$0xff]  ;;  %v41_v12 = vld [vmem:[%s531_s0 + $0x30] sm:$0xff]  ;;  %v40_v13 = vld [vmem:[%s531_s0 + $0x28] sm:$0xff]  ;;  %s396_s2 = scalar_lea.vmem %s275_s8, 32  ;;  %p397_p6 = scmp.lt.s32.totalorder %s275_s8, %s275_s8 }
  0x12   :  { %v39_v14 = vld [vmem:[%s531_s0 + $0x20] sm:$0xff]  ;;  %v38_v15 = vld [vmem:[%s531_s0 + $0x18] sm:$0xff]  ;;  %v37_v16 = vld [vmem:[%s531_s0 + $0x10] sm:$0xff] }
  0x13   :  { %v36_v17 = vld [vmem:[%s531_s0 + $0x8] sm:$0xff]  ;;  %v35_v18 = vld [vmem:[%s531_s0] sm:$0xff] }
  0x14   :  { %325 = vmatpush3.xpose.msk.msra.mxu0 %vm57_vm1, %v49_v3  ;;  %v34_v19 = vld [vmem:[#allocation3] sm:$0x1f] }
  0x15   :  { %326 = vmatprep.subr.mxu0 %v417_v0  ;;  %v180_v25 = vld [vmem:[%s534_s3] sm:$0x1]  ;;  %s392_s3 = scalar_lea.vmem %s275_s8, 16 }
  0x16   :  { %p393_p5 = scmp.ne.s32.totalorder %s275_s8, %s392_s3  ;;  %p398_p7 = scmp.lt.s32.totalorder %s396_s2, %s392_s3 }
  0x18   :  { %327 = vmatpush3.xpose.msk.msra.mxu0 %vm57_vm1, %v48_v5  ;;  %p399_p8 = por %p398_p7, %p397_p6 }
  0x19   :  { %328 = vmatprep.subr.mxu0 %v417_v0 }
  0x1a   :  { %p400_p9 = pnand %p399_p8, %p393_p5 }
  0x1c   :  { %329 = vmatpush3.xpose.msk.msra.mxu0 %vm57_vm1, %v47_v6 }
  0x1d   :  { %330 = vmatprep.subr.mxu0 %v417_v0 }
  0x20   :  { %331 = vmatpush3.xpose.msk.msra.mxu0 %vm57_vm1, %v46_v7 }
  0x21   :  { %332 = vmatprep.subr.mxu0 %v417_v0 }
  0x24   :  { %333 = vmatpush3.xpose.msk.msra.mxu0 %vm57_vm1, %v45_v8 }
  0x25   :  { %334 = vmatprep.subr.mxu0 %v417_v0 }
  0x28   :  { %335 = vmatpush3.xpose.msk.msra.mxu0 %vm57_vm1, %v44_v9 }
  0x29   :  { %336 = vmatprep.subr.mxu0 %v417_v0 }
  0x2c   :  { %337 = vmatpush3.xpose.msk.msra.mxu0 %vm57_vm1, %v43_v10 }
  0x2d   :  { %338 = vmatprep.subr.mxu0 %v417_v0 }
  0x30   :  { %339 = vmatpush3.xpose.msk.msra.mxu0 %vm57_vm1, %v42_v11 }
  0x31   :  { %340 = vmatprep.subr.mxu0 %v417_v0 }
  0x34   :  { %341 = vmatpush3.xpose.msk.msra.mxu0 %vm57_vm1, %v41_v12 }
  0x35   :  { %342 = vmatprep.subr.mxu0 %v417_v0 }
  0x38   :  { %343 = vmatpush3.xpose.msk.msra.mxu0 %vm57_vm1, %v40_v13 }
  0x39   :  { %344 = vmatprep.subr.mxu0 %v417_v0 }
  0x3c   :  { %345 = vmatpush3.xpose.msk.msra.mxu0 %vm57_vm1, %v39_v14 }
  0x3d   :  { %346 = vmatprep.subr.mxu0 %v417_v0 }
  0x40   :  { %347 = vmatpush3.xpose.msk.msra.mxu0 %vm57_vm1, %v38_v15 }
  0x41   :  { %348 = vmatprep.subr.mxu0 %v417_v0 }
  0x44   :  { %349 = vmatpush3.xpose.msk.msra.mxu0 %vm57_vm1, %v37_v16 }
  0x45   :  { %350 = vmatprep.subr.mxu0 %v417_v0 }
  0x48   :  { %351 = vmatpush3.xpose.msk.msra.mxu0 %vm57_vm1, %v36_v17 }
  0x49   :  { %352 = vmatprep.subr.mxu0 %v417_v0 }
  0x4c   :  { %353 = vmatpush3.xpose.msk.msra.mxu0 %vm57_vm1, %v35_v18 }
  0x4f   :  { %355 = vmatmul.mubr.msk.f32.vlgmr.msra.gmra.mxu0 %vm57_vm1, %v34_v19 }
  0x8c   :  { %v55_v20 = vpop.permute.xlu0 %54 }
 0x10f   :  { %v175_v21 = vpop.f32.mrf.mxu0 }
 0x110   :  { %v176_v22 = vadd.f32 %v175_v21, %v55_v20 }
 0x111   :  { %v356_v23 = vpop.f32.mrf.mxu0 }
 0x112   :  { %v179_v24 = vmax.f32 %v176_v22, 0.0 }
 0x114   :  { %358 = vmatpush3.msk.msra.mxu1 %vm187_vm2, %v179_v24 }
 0x115   :  { %360 = vmatmul.mubr.msk.f32.vlgmr.msra.gmra.mxu1 %vm183_vm3, %v180_v25 }
 0x1d5   :  { %v257_v27 = vpop.f32.mrf.mxu1 }
 0x1d6   :  { %v258_v28 = vadd.f32 %v257_v27, %v182_v26 }
 0x1d7   :  { %v361_v29 = vpop.f32.mrf.mxu1 }
 0x1d8   :  { %v302_v30 = vmul.f32 -1.442695, %v258_v28 }
 0x1da   :  { %368 = vpow2.f32 %v302_v30 }
 0x1e7   :  { %v369_v31 = vpop.eup %368 }
 0x1e8   :  { %v264_v32 = vadd.f32 1.0, %v369_v31 }
 0x1ea   :  { %370 = vrcp.f32 %v264_v32 }
 0x1f7   :  { %v371_v33 = vpop.eup %370 }
 0x1f8   :  { %267 = vst [vmem:[#allocation6] sm:$0x1] %v371_v33 }
 0x1f9   :  { %403 = shalt.err (!%p400_p9)
}
 0x1fa   :  { %277 = dma.vmem_to_hbm [thread:$0]  %s275_s8, 16, %s536_s5, [#allocation5]  }
 0x1fb   :  { %414 = dma.done.wait [#allocation5], 16  }
 0x1fc   :  { %415 = vsyncadd [#allocation5], 4294967280 }
 0x1fd   :  { %281 = vsyncpa [#allocation4], 1 }
 0x1fe   :  { %282 = vsyncpa [#allocation5], 1 }

</bundles_post_ra>
